<compile_context>
chip_gen: v6e
topology: v6e:2x2x1
jax: 0.10.0
libtpu: 0.0.40
codegen_flags: <defaults>
</compile_context>

<pallas_src>
import functools

import jax
import jax.numpy as jnp
from jax.experimental import pallas as pl
from jax.experimental.pallas import tpu as pltpu

C_IN = 1
C_OUT = 32
K = 3
LANE = 128

# Keep per-step VMEM footprint well under the smallest physical VMEM
# (v7x: 64 MiB); raise the scoped limit above the 16/32 MiB defaults.
_VMEM_TILING_BUDGET = 24 * 1024 * 1024
_VMEM_LIMIT_BYTES = 48 * 1024 * 1024


def _round_up(x, m):
    return (x + m - 1) // m * m


def _conv_relu_kernel(x_ref, w_ref, b_ref, o_ref, *, shifts, q_img):
    # x_ref: (1, batch_tile, tile_len)        zero-padded flat images (lane-dense)
    # w_ref: (C_OUT, K*K)                     weights, tap-major columns (kh*K+kw)
    # b_ref: (C_OUT, 1)                       bias
    # o_ref: (1, batch_tile, C_OUT, q_img)    output: per-image channel rows x flat pos
    w = w_ref[...]                            # (C_OUT, 9)
    b = b_ref[...]                            # (C_OUT, 1)

    # C_in == 1 => conv = sum over 9 taps of (per-channel scalar) * (lane-
    # shifted input window).  The accumulator is already in the final
    # (batch, C_OUT, positions) layout, so the store is a full-width vst and
    # no transpose / im2col is ever materialized.
    s0 = shifts[0]
    acc = w[:, 0:1] * x_ref[0, :, s0:s0 + q_img][:, None, :]   # (bt, C_OUT, q_img)
    for t in range(1, K * K):
        s = shifts[t]
        acc = acc + w[:, t:t + 1] * x_ref[0, :, s:s + q_img][:, None, :]

    o_ref[0] = jnp.maximum(acc + b, 0.0).astype(o_ref.dtype)


def _per_image_vmem_bytes(q_img, tile_len, out_itemsize):
    acc = C_OUT * q_img * 4                       # f32 accumulator temp
    out_blk = 2 * C_OUT * q_img * out_itemsize    # double-buffered output block
    x_blk = 2 * tile_len * 4                      # double-buffered input slab
    tap_tmp = 2 * q_img * 4                       # shifted-slice temporaries
    return acc + out_blk + x_blk + tap_tmp


def _choose_batch_tile(n, per_img_bytes, budget_bytes):
    # Largest batch_tile that (a) fits the VMEM budget, (b) leaves >= 2-4 grid
    # steps (pipelining + v7x megacore), (c) divides n (no junk images).
    bt_cap = max(1, int(budget_bytes // max(1, per_img_bytes)))
    target_steps = min(n, 4)
    bt_cap = min(bt_cap, max(1, n // target_steps))
    bt_cap = max(1, min(bt_cap, n))
    for bt in range(bt_cap, 0, -1):
        if n % bt == 0:
            return bt
    return bt_cap


def net_forward(x_nchw, weight_oihw, bias, *, out_dtype=jnp.float32):
    """x_nchw: (N, 1, H, W) float32 -> (N, 32, H-2, W-2) out_dtype."""
    n, c, h, w = x_nchw.shape
    assert c == C_IN
    h_out, w_out = h - K + 1, w - K + 1

    # Flat, lane-dense per-image slot: output positions j = r*W + c (r < H_out).
    q_img = _round_up(h_out * w, LANE)              # output lanes per image
    shift_max = (K - 1) * w + (K - 1)
    tile_len = _round_up(q_img + shift_max, LANE)   # input lanes per image (>= H*W)

    out_itemsize = jnp.dtype(out_dtype).itemsize
    per_img = _per_image_vmem_bytes(q_img, tile_len, out_itemsize)
    batch_tile = _choose_batch_tile(n, per_img, _VMEM_TILING_BUDGET)
    g = -(-n // batch_tile)
    n_pad = g * batch_tile

    # --- host-side layout plumbing: lane-dense zero-padded input slab ---
    x_flat = x_nchw.reshape(n, h * w).astype(jnp.float32)
    if n_pad > n:
        x_flat = jnp.concatenate(
            [x_flat, jnp.zeros((n_pad - n, h * w), jnp.float32)], axis=0)
    x_slab = jnp.zeros((g, batch_tile, tile_len), jnp.float32)
    x_slab = x_slab.at[:, :, :h * w].set(x_flat.reshape(g, batch_tile, h * w))

    w_mat = weight_oihw.reshape(C_OUT, K * K).astype(jnp.float32)   # (32, 9)
    b_mat = bias.reshape(C_OUT, 1).astype(jnp.float32)              # (32, 1)

    shifts = tuple(kh * w + kw for kh in range(K) for kw in range(K))
    kernel = functools.partial(_conv_relu_kernel, shifts=shifts, q_img=q_img)

    cost = pl.CostEstimate(
        flops=2 * n * h_out * w_out * C_OUT * K * K,
        transcendentals=0,
        bytes_accessed=int(x_slab.size * 4
                           + n_pad * C_OUT * q_img * out_itemsize
                           + w_mat.size * 4 + b_mat.size * 4))

    out = pl.pallas_call(
        kernel,
        out_shape=jax.ShapeDtypeStruct((g, batch_tile, C_OUT, q_img), out_dtype),
        grid_spec=pltpu.PrefetchScalarGridSpec(
            num_scalar_prefetch=0,
            grid=(g,),
            in_specs=[
                pl.BlockSpec((1, batch_tile, tile_len), lambda i: (i, 0, 0)),
                pl.BlockSpec((C_OUT, K * K), lambda i: (0, 0)),
                pl.BlockSpec((C_OUT, 1), lambda i: (0, 0)),
            ],
            out_specs=pl.BlockSpec((1, batch_tile, C_OUT, q_img),
                                   lambda i: (i, 0, 0, 0)),
        ),
        compiler_params=pltpu.CompilerParams(
            dimension_semantics=("parallel",),
            vmem_limit_bytes=_VMEM_LIMIT_BYTES),
        cost_estimate=cost,
    )(x_slab, w_mat, b_mat)

    # --- back to NCHW: only slicing of junk lanes, no transpose ---
    out = out.reshape(n_pad, C_OUT, q_img)[:n, :, :h_out * w]
    out = out.reshape(n, C_OUT, h_out, w)[..., :w_out]
    return out


def _reference(x_nchw, weight_oihw, bias):
    y = jax.lax.conv_general_dilated(
        x_nchw, weight_oihw, window_strides=(1, 1), padding="VALID",
        dimension_numbers=("NCHW", "OIHW", "NCHW"))
    y = y + bias.reshape(1, C_OUT, 1, 1)
    return jnp.maximum(y, 0.0)


if __name__ == "__main__":
    key = jax.random.PRNGKey(0)
    k_x, k_w, k_b = jax.random.split(key, 3)

    # Small, conv-consistent shapes: batch=2, 1 input channel, 16x16 spatial.
    N, H, W = 2, 16, 16
    x = jax.random.normal(k_x, (N, C_IN, H, W), dtype=jnp.float32)

    # Deterministic parameter init (uniform in +-1/sqrt(fan_in), like PyTorch).
    fan_in = C_IN * K * K
    bound = 1.0 / (fan_in ** 0.5)
    weight = jax.random.uniform(k_w, (C_OUT, C_IN, K, K), jnp.float32,
                                minval=-bound, maxval=bound)
    bias = jax.random.uniform(k_b, (C_OUT,), jnp.float32,
                              minval=-bound, maxval=bound)

    out = jax.block_until_ready(net_forward(x, weight, bias))

    ref = _reference(x, weight, bias)
    assert out.shape == (N, C_OUT, H - 2, W - 2), out.shape
    # Serial 9-term accumulation order differs from conv_general_dilated; keep
    # tolerance at 1e-5 (do not tighten).
    assert jnp.allclose(out, ref, atol=1e-5, rtol=1e-5), "mismatch vs reference"

    print("KERNEL_OK")
</pallas_src>

<mosaic_0001>
module attributes {stable_mosaic.version = 11 : i64} {
  func.func @_conv_relu_kernel(%arg0: i32, %arg1: memref<1x1x384xf32, #tpu.memory_space<vmem>>, %arg2: memref<32x9xf32, #tpu.memory_space<vmem>>, %arg3: memref<32x1xf32, #tpu.memory_space<vmem>>, %arg4: memref<1x1x32x256xf32, #tpu.memory_space<vmem>>) attributes {dimension_semantics = [#tpu.dimension_semantics<parallel>], iteration_bounds = array<i64: 2>, scalar_prefetch = 0 : i64, scratch_operands = 0 : i64, tpu.core_type = #tpu.core_type<tc>, window_params = [{transform_indices = @transform_0, window_bounds = array<i64: 1, 1, 384>}, {pipeline_mode = #tpu.pipeline_mode<synchronous>, transform_indices = @transform_1, window_bounds = array<i64: 32, 9>}, {pipeline_mode = #tpu.pipeline_mode<synchronous>, transform_indices = @transform_2, window_bounds = array<i64: 32, 1>}, {transform_indices = @transform_3, window_bounds = array<i64: 1, 1, 32, 256>}]} {
    %c0 = arith.constant 0 : index
    %c0_0 = arith.constant 0 : index
    %0 = vector.load %arg2[%c0, %c0_0] : memref<32x9xf32, #tpu.memory_space<vmem>>, vector<32x9xf32>
    %c0_1 = arith.constant 0 : index
    %c0_2 = arith.constant 0 : index
    %1 = vector.load %arg3[%c0_1, %c0_2] : memref<32x1xf32, #tpu.memory_space<vmem>>, vector<32x1xf32>
    %2 = vector.extract_strided_slice %0 {offsets = [0, 0], sizes = [32, 1], strides = [1, 1]} : vector<32x9xf32> to vector<32x1xf32>
    %c0_3 = arith.constant 0 : index
    %c0_4 = arith.constant 0 : index
    %c0_5 = arith.constant 0 : index
    %3 = vector.load %arg1[%c0_3, %c0_4, %c0_5] : memref<1x1x384xf32, #tpu.memory_space<vmem>>, vector<1x1x256xf32>
    %4 = vector.shape_cast %3 : vector<1x1x256xf32> to vector<1x256xf32>
    %5 = vector.shape_cast %4 : vector<1x256xf32> to vector<1x1x256xf32>
    %6 = vector.shape_cast %2 : vector<32x1xf32> to vector<1x32x1xf32>
    %7 = vector.broadcast %6 : vector<1x32x1xf32> to vector<1x32x256xf32>
    %8 = vector.broadcast %5 : vector<1x1x256xf32> to vector<1x32x256xf32>
    %9 = arith.mulf %7, %8 : vector<1x32x256xf32>
    %10 = vector.extract_strided_slice %0 {offsets = [0, 1], sizes = [32, 1], strides = [1, 1]} : vector<32x9xf32> to vector<32x1xf32>
    %c0_6 = arith.constant 0 : index
    %c0_7 = arith.constant 0 : index
    %c1 = arith.constant 1 : index
    %11 = vector.load %arg1[%c0_6, %c0_7, %c1] : memref<1x1x384xf32, #tpu.memory_space<vmem>>, vector<1x1x256xf32>
    %12 = vector.shape_cast %11 : vector<1x1x256xf32> to vector<1x256xf32>
    %13 = vector.shape_cast %12 : vector<1x256xf32> to vector<1x1x256xf32>
    %14 = vector.shape_cast %10 : vector<32x1xf32> to vector<1x32x1xf32>
    %15 = vector.broadcast %14 : vector<1x32x1xf32> to vector<1x32x256xf32>
    %16 = vector.broadcast %13 : vector<1x1x256xf32> to vector<1x32x256xf32>
    %17 = arith.mulf %15, %16 : vector<1x32x256xf32>
    %18 = arith.addf %9, %17 : vector<1x32x256xf32>
    %19 = vector.extract_strided_slice %0 {offsets = [0, 2], sizes = [32, 1], strides = [1, 1]} : vector<32x9xf32> to vector<32x1xf32>
    %c0_8 = arith.constant 0 : index
    %c0_9 = arith.constant 0 : index
    %c2 = arith.constant 2 : index
    %20 = vector.load %arg1[%c0_8, %c0_9, %c2] : memref<1x1x384xf32, #tpu.memory_space<vmem>>, vector<1x1x256xf32>
    %21 = vector.shape_cast %20 : vector<1x1x256xf32> to vector<1x256xf32>
    %22 = vector.shape_cast %21 : vector<1x256xf32> to vector<1x1x256xf32>
    %23 = vector.shape_cast %19 : vector<32x1xf32> to vector<1x32x1xf32>
    %24 = vector.broadcast %23 : vector<1x32x1xf32> to vector<1x32x256xf32>
    %25 = vector.broadcast %22 : vector<1x1x256xf32> to vector<1x32x256xf32>
    %26 = arith.mulf %24, %25 : vector<1x32x256xf32>
    %27 = arith.addf %18, %26 : vector<1x32x256xf32>
    %28 = vector.extract_strided_slice %0 {offsets = [0, 3], sizes = [32, 1], strides = [1, 1]} : vector<32x9xf32> to vector<32x1xf32>
    %c0_10 = arith.constant 0 : index
    %c0_11 = arith.constant 0 : index
    %c16 = arith.constant 16 : index
    %29 = vector.load %arg1[%c0_10, %c0_11, %c16] : memref<1x1x384xf32, #tpu.memory_space<vmem>>, vector<1x1x256xf32>
    %30 = vector.shape_cast %29 : vector<1x1x256xf32> to vector<1x256xf32>
    %31 = vector.shape_cast %30 : vector<1x256xf32> to vector<1x1x256xf32>
    %32 = vector.shape_cast %28 : vector<32x1xf32> to vector<1x32x1xf32>
    %33 = vector.broadcast %32 : vector<1x32x1xf32> to vector<1x32x256xf32>
    %34 = vector.broadcast %31 : vector<1x1x256xf32> to vector<1x32x256xf32>
    %35 = arith.mulf %33, %34 : vector<1x32x256xf32>
    %36 = arith.addf %27, %35 : vector<1x32x256xf32>
    %37 = vector.extract_strided_slice %0 {offsets = [0, 4], sizes = [32, 1], strides = [1, 1]} : vector<32x9xf32> to vector<32x1xf32>
    %c0_12 = arith.constant 0 : index
    %c0_13 = arith.constant 0 : index
    %c17 = arith.constant 17 : index
    %38 = vector.load %arg1[%c0_12, %c0_13, %c17] : memref<1x1x384xf32, #tpu.memory_space<vmem>>, vector<1x1x256xf32>
    %39 = vector.shape_cast %38 : vector<1x1x256xf32> to vector<1x256xf32>
    %40 = vector.shape_cast %39 : vector<1x256xf32> to vector<1x1x256xf32>
    %41 = vector.shape_cast %37 : vector<32x1xf32> to vector<1x32x1xf32>
    %42 = vector.broadcast %41 : vector<1x32x1xf32> to vector<1x32x256xf32>
    %43 = vector.broadcast %40 : vector<1x1x256xf32> to vector<1x32x256xf32>
    %44 = arith.mulf %42, %43 : vector<1x32x256xf32>
    %45 = arith.addf %36, %44 : vector<1x32x256xf32>
    %46 = vector.extract_strided_slice %0 {offsets = [0, 5], sizes = [32, 1], strides = [1, 1]} : vector<32x9xf32> to vector<32x1xf32>
    %c0_14 = arith.constant 0 : index
    %c0_15 = arith.constant 0 : index
    %c18 = arith.constant 18 : index
    %47 = vector.load %arg1[%c0_14, %c0_15, %c18] : memref<1x1x384xf32, #tpu.memory_space<vmem>>, vector<1x1x256xf32>
    %48 = vector.shape_cast %47 : vector<1x1x256xf32> to vector<1x256xf32>
    %49 = vector.shape_cast %48 : vector<1x256xf32> to vector<1x1x256xf32>
    %50 = vector.shape_cast %46 : vector<32x1xf32> to vector<1x32x1xf32>
    %51 = vector.broadcast %50 : vector<1x32x1xf32> to vector<1x32x256xf32>
    %52 = vector.broadcast %49 : vector<1x1x256xf32> to vector<1x32x256xf32>
    %53 = arith.mulf %51, %52 : vector<1x32x256xf32>
    %54 = arith.addf %45, %53 : vector<1x32x256xf32>
    %55 = vector.extract_strided_slice %0 {offsets = [0, 6], sizes = [32, 1], strides = [1, 1]} : vector<32x9xf32> to vector<32x1xf32>
    %c0_16 = arith.constant 0 : index
    %c0_17 = arith.constant 0 : index
    %c32 = arith.constant 32 : index
    %56 = vector.load %arg1[%c0_16, %c0_17, %c32] : memref<1x1x384xf32, #tpu.memory_space<vmem>>, vector<1x1x256xf32>
    %57 = vector.shape_cast %56 : vector<1x1x256xf32> to vector<1x256xf32>
    %58 = vector.shape_cast %57 : vector<1x256xf32> to vector<1x1x256xf32>
    %59 = vector.shape_cast %55 : vector<32x1xf32> to vector<1x32x1xf32>
    %60 = vector.broadcast %59 : vector<1x32x1xf32> to vector<1x32x256xf32>
    %61 = vector.broadcast %58 : vector<1x1x256xf32> to vector<1x32x256xf32>
    %62 = arith.mulf %60, %61 : vector<1x32x256xf32>
    %63 = arith.addf %54, %62 : vector<1x32x256xf32>
    %64 = vector.extract_strided_slice %0 {offsets = [0, 7], sizes = [32, 1], strides = [1, 1]} : vector<32x9xf32> to vector<32x1xf32>
    %c0_18 = arith.constant 0 : index
    %c0_19 = arith.constant 0 : index
    %c33 = arith.constant 33 : index
    %65 = vector.load %arg1[%c0_18, %c0_19, %c33] : memref<1x1x384xf32, #tpu.memory_space<vmem>>, vector<1x1x256xf32>
    %66 = vector.shape_cast %65 : vector<1x1x256xf32> to vector<1x256xf32>
    %67 = vector.shape_cast %66 : vector<1x256xf32> to vector<1x1x256xf32>
    %68 = vector.shape_cast %64 : vector<32x1xf32> to vector<1x32x1xf32>
    %69 = vector.broadcast %68 : vector<1x32x1xf32> to vector<1x32x256xf32>
    %70 = vector.broadcast %67 : vector<1x1x256xf32> to vector<1x32x256xf32>
    %71 = arith.mulf %69, %70 : vector<1x32x256xf32>
    %72 = arith.addf %63, %71 : vector<1x32x256xf32>
    %73 = vector.extract_strided_slice %0 {offsets = [0, 8], sizes = [32, 1], strides = [1, 1]} : vector<32x9xf32> to vector<32x1xf32>
    %c0_20 = arith.constant 0 : index
    %c0_21 = arith.constant 0 : index
    %c34 = arith.constant 34 : index
    %74 = vector.load %arg1[%c0_20, %c0_21, %c34] : memref<1x1x384xf32, #tpu.memory_space<vmem>>, vector<1x1x256xf32>
    %75 = vector.shape_cast %74 : vector<1x1x256xf32> to vector<1x256xf32>
    %76 = vector.shape_cast %75 : vector<1x256xf32> to vector<1x1x256xf32>
    %77 = vector.shape_cast %73 : vector<32x1xf32> to vector<1x32x1xf32>
    %78 = vector.broadcast %77 : vector<1x32x1xf32> to vector<1x32x256xf32>
    %79 = vector.broadcast %76 : vector<1x1x256xf32> to vector<1x32x256xf32>
    %80 = arith.mulf %78, %79 : vector<1x32x256xf32>
    %81 = arith.addf %72, %80 : vector<1x32x256xf32>
    %82 = vector.shape_cast %1 : vector<32x1xf32> to vector<1x32x1xf32>
    %83 = vector.broadcast %82 : vector<1x32x1xf32> to vector<1x32x256xf32>
    %84 = arith.addf %81, %83 : vector<1x32x256xf32>
    %cst = arith.constant 0.000000e+00 : f32
    %85 = vector.broadcast %cst : f32 to vector<1x32x256xf32>
    %86 = arith.maximumf %84, %85 : vector<1x32x256xf32>
    %c0_22 = arith.constant 0 : index
    %c0_23 = arith.constant 0 : index
    %c0_24 = arith.constant 0 : index
    %c0_25 = arith.constant 0 : index
    %87 = vector.load %arg4[%c0_22, %c0_23, %c0_24, %c0_25] : memref<1x1x32x256xf32, #tpu.memory_space<vmem>>, vector<1x1x32x256xf32>
    %88 = vector.shape_cast %87 : vector<1x1x32x256xf32> to vector<1x32x256xf32>
    %89 = vector.shape_cast %86 : vector<1x32x256xf32> to vector<1x1x32x256xf32>
    tpu.vector_store %arg4[%c0_22, %c0_23, %c0_24, %c0_25], %89 {strides = array<i32>} : memref<1x1x32x256xf32, #tpu.memory_space<vmem>>, vector<1x1x32x256xf32>,
    return
  }
  func.func @transform_0(%arg0: i32) -> (i32, i32, i32) {
    %c0_i32 = arith.constant 0 : i32
    %c0_i32_0 = arith.constant 0 : i32
    %c0_i32_1 = arith.constant 0 : i32
    return %arg0, %c0_i32, %c0_i32_0 : i32, i32, i32
  }
  func.func @transform_1(%arg0: i32) -> (i32, i32) {
    %c0_i32 = arith.constant 0 : i32
    %c0_i32_0 = arith.constant 0 : i32
    %c0_i32_1 = arith.constant 0 : i32
    return %c0_i32, %c0_i32_0 : i32, i32
  }
  func.func @transform_2(%arg0: i32) -> (i32, i32) {
    %c0_i32 = arith.constant 0 : i32
    %c0_i32_0 = arith.constant 0 : i32
    %c0_i32_1 = arith.constant 0 : i32
    return %c0_i32, %c0_i32_0 : i32, i32
  }
  func.func @transform_3(%arg0: i32) -> (i32, i32, i32, i32) {
    %c0_i32 = arith.constant 0 : i32
    %c0_i32_0 = arith.constant 0 : i32
    %c0_i32_1 = arith.constant 0 : i32
    %c0_i32_2 = arith.constant 0 : i32
    return %arg0, %c0_i32, %c0_i32_0, %c0_i32_1 : i32, i32, i32, i32
  }
}

</mosaic_0001>

<bundles_post_ra>
// kernel: tpu_custom_call.1
= control target key start
LH: loop header
LB: loop body
LE: loop exit
PB: predicated region body
PF: predicated region fallthrough
CT: control target
= control target key end

     0   :  { %8 = vsyncpa [#allocation3], 0  ;;  %s1813_s0 = inlined_call_operand.vmem [shape: f32[2,1,384], index: 0, kind: input, shape index: {}]   ;;  %s1814_s1 = inlined_call_operand.vmem [shape: f32[32,9], index: 1, kind: input, shape index: {}]   ;;  %s1815_s2 = inlined_call_operand.vmem [shape: f32[32,1], index: 2, kind: input, shape index: {}]   ;;  %s1816_s3 = inlined_call_operand.hbm [shape: f32[2,1,32,256], index: 3, kind: output, shape index: {}]  }
   0x1   :  { %10 = vsyncpa [#allocation3 + $0x1], 0  ;;  %s1254_s12 = smov 0   ;;  %s1256_s13 = smov 0  }
   0x2   :  { %s1258_s14 = smov 0   ;;  %s1260_s15 = smov 0  }
   0x3 LB: > { %s1275_s16 = sadd.s32 4294967295, %s1212_s15   ;;  %s1063_s17 = sadd.s32 4294967294, %s1212_s15   ;;  %s1212_s15 = sphi %s1260_s15, %s1822_s15   ;;  %s1208_s14 = sphi %s1258_s14, %s1821_s14   ;;  %s1204_s13 = sphi %s1256_s13, %s1820_s13   ;;  %s1200_s12 = sphi %s1254_s12, %s1819_s12  }
   0x4   : > { %s1279_s18 = sadd.s32 1, %s1212_s15   ;;  %s91_s19 = sadd.s32 1, %s1208_s14 }
   0x5   : > { %s88_s20 = ssub.s32 %s1212_s15, %s1279_s18  ;;  %p101_p0 = scmp.ne.s32.totalorder %s1208_s14, %s1204_s13 }
   0x6   : > { %p89_p1 = scmp.eq.s32.totalorder %s88_s20, 0  ;;  %p102_p2 = scmp.eq.s32.totalorder %s1275_s16, 1 }
   0x7   : > { %p107_p3 = scmp.ne.s32.totalorder %s1204_s13, %s1200_s12  ;;  %p108_p4 = scmp.eq.s32.totalorder %s1063_s17, 1 }
   0x8   : > { %s1290_s21 = scalar_select %p89_p1, %s1208_s14, %s91_s19  }
   0x9   : > { %p1292_p5 = por %p102_p2, %p101_p0  ;;  %p1296_p6 = por %p108_p4, %p107_p3 }
   0xa   : > { %p1066_p7 = scmp.ge.s32.totalorder %s1212_s15, 1  ;;  %p139_p8 = scmp.lt.s32.totalorder %s1212_s15, 3 }
   0xc   : > { %p140_p9 = pnand %p1066_p7, %p139_p8 }
   0xd   : > { %p162_p10 = scmp.lt.s32.totalorder (!%p140_p9), %s1275_s16, 1  ;;  %s1220_s10 = smov (!%p140_p9), 127  }
   0xe   : > { %143 = sbr.rel (%p140_p9) target bundleno = 745 (0x2e9), region = 32  ;;  %s1221_s11 = smov (!%p140_p9), 126  }
   0xf   : > { %s1222_s17 = smov (!%p140_p9), 112   ;;  %s1223_s19 = smov (!%p140_p9), 111  }
  0x10   : > { %s1225_s20 = smov (!%p140_p9), 110   ;;  %s1228_s24 = smov (!%p140_p9), 96  }
  0x11   : > { %s1229_s25 = smov (!%p140_p9), 95   ;;  %s159_s8 = sand.u32 (!%p140_p9), 1, %s1204_s13  }
  0x12   : > { %s1067_s9 = sshll.u32 (!%p140_p9), %s159_s8, 6  ;;  %s1231_s26 = smov (!%p140_p9), [#allocation2]  }
  0x13   : > { %v1305_v0 = vld [vmem:[%s1814_s1 + $0x10] sm:$0xff]  ;;  %v1310_v1 = vld [vmem:[%s1814_s1] sm:$0xff]  ;;  %v196_v2 = vlaneseq  ;;  %v1214_v3 = vmov 0   ;;  %v1215_v4 = vmov 1   ;;  %v1319_v6 = vld [vmem:[%s1814_s1 + $0x18] sm:$0xff]  ;;  %s163_s30 = scalar_select %p162_p10, %s1275_s16, 1 }
  0x14   : > { %1133 = vset.pattern.permute.xlu1 %v1214_v3  ;;  %1134 = vset.pattern.permute.xlu0 %v1215_v4  ;;  %v1332_v9 = vld [vmem:[%s1814_s1 + $0x8] sm:$0xff]  ;;  %v1216_v13 = vmov 2   ;;  %v1217_v14 = vmov 3   ;;  %v1218_v15 = vmov 4   ;;  %v1219_v16 = vmov 5   ;;  %s1156_s27 = sshll.u32 %s1231_s26, 4  ;;  %s1157_s27 = int_to_ptr.vmem [resolvable:$false] %s1156_s27 }
  0x15   : > { %187 = vperm.xlu1 %1133, %v1305_v0   ;;  %216 = vperm.xlu0 %1134, %v1310_v1   ;;  %v197_v5 = vshrl.u32 %v196_v2, 7  ;;  %s1074_s4 = smul.u32 3, %s163_s30  ;;  %vm295_vm0 = vcmask 1039360   ;;  %vm384_vm1 = vcmask 1031168   ;;  %vm473_vm2 = vcmask 916480   ;;  %s1158_s28 = scalar_lea.vmem %s1157_s27, 2048 }
  0x16   : > { %vm562_vm3 = vcmask 908288   ;;  %vm651_vm4 = vcmask 900096   ;;  %vm740_vm5 = vcmask 785408   ;;  %vm829_vm6 = vcmask 777216  }
  0x17   : > { %v198_v7 = vsub.s32 0, %v197_v5  ;;  %v202_v8 = vsub.s32 1, %v197_v5  ;;  %s1327_s7 = scalar_lea.vmem %s1813_s0, %s1074_s4  ;;  %v242_v18 = vsub.s32 2, %v197_v5  ;;  %vm918_vm7 = vcmask 769024  }
  0x18   : > { %v174_v10 = vld [vmem:[%s1327_s7] sm:$0x3] }
  0x19   : > { %192 = vperm.xlu1 %1133, %v1319_v6   ;;  %228 = vperm.xlu0 %1134, %v1319_v6   ;;  %v1335_v11 = vrot.slane %v174_v10, %v198_v7  ;;  %v1337_v12 = vrot.slane %v174_v10, %v202_v8  ;;  %v214_v17 = vld [vmem:[%s1327_s7] sm:$0x7]  ;;  %s1230_s7 = smov 94  }
  0x1a   : > { %v1354_v19 = vrot.slane %v214_v17, %v198_v7  ;;  %v1356_v20 = vrot.slane %v214_v17, %v202_v8  ;;  %v1358_v21 = vrot.slane %v214_v17, %v242_v18 }
  0x1d   : > { %1135 = vset.pattern.permute.xlu1 %v1215_v4  ;;  %1137 = vset.pattern.permute.xlu0 %v1216_v13 }
  0x1e   : > { %220 = vperm.xlu1 %1135, %v1332_v9   ;;  %325 = vperm.xlu0 %1137, %v1332_v9  }
  0x22   : > { %224 = vperm.xlu1 %1135, %v1305_v0   ;;  %1138 = vset.pattern.permute.xlu0 %v1217_v14 }
  0x23   : > { %410 = vperm.xlu0 %1138, %v1310_v1  }
  0x26   : > { %1136 = vset.pattern.permute.xlu1 %v1216_v13 }
  0x27   : > { %321 = vperm.xlu1 %1136, %v1310_v1   ;;  %422 = vperm.xlu0 %1138, %v1319_v6  }
  0x2b   : > { %329 = vperm.xlu1 %1136, %v1305_v0   ;;  %1141 = vset.pattern.permute.xlu0 %v1218_v15 }
  0x2c   : > { %503 = vperm.xlu0 %1141, %v1332_v9  }
  0x2f   : > { %333 = vperm.xlu1 %1136, %v1319_v6  }
  0x30   : > { %1142 = vset.pattern.permute.xlu0 %v1219_v16 }
  0x33   : > { %1139 = vset.pattern.permute.xlu1 %v1217_v14 }
  0x34   : > { %414 = vperm.xlu1 %1139, %v1332_v9  }
  0x38   : > { %418 = vperm.xlu1 %1139, %v1305_v0  }
  0x3c   : > { %1140 = vset.pattern.permute.xlu1 %v1218_v15 }
  0x3d   : > { %499 = vperm.xlu1 %1140, %v1310_v1  }
  0x41   : > { %507 = vperm.xlu1 %1140, %v1305_v0  }
  0x45   : > { %511 = vperm.xlu1 %1140, %v1319_v6  }
  0x49   : > { %1143 = vset.pattern.permute.xlu1 %v1219_v16 }
  0x90   : > { %v1360_v22 = vpop.permute.xlu1 %187  ;;  %v217_v23 = vpop.permute.xlu0 %216 }
  0x91   : > { %v247_v24 = vmul.f32 %v1354_v19, %v217_v23  ;;  %v248_v25 = vmul.f32 %v1356_v20, %v217_v23  ;;  %v249_v26 = vmul.f32 %v1358_v21, %v217_v23 }
  0x93   : > { %271 = vrot.lane.b32.xlu1 %v247_v24, %s1220_s10  ;;  %273 = vrot.lane.b32.xlu0 %v248_v25, %s1220_s10 }
  0x94   : > { %v1365_v27 = vpop.permute.xlu1 %192  ;;  %v229_v36 = vpop.permute.xlu0 %228 }
  0x95   : > { %v256_v37 = vmul.f32 %v1354_v19, %v229_v36  ;;  %v257_v38 = vmul.f32 %v1356_v20, %v229_v36  ;;  %v258_v42 = vmul.f32 %v1358_v21, %v229_v36 }
  0x97   : > { %275 = vrot.lane.b32.xlu1 %v249_v26, %s1220_s10 }
  0x99   : > { %v221_v28 = vpop.permute.xlu1 %220  ;;  %v326_v41 = vpop.permute.xlu0 %325 }
  0x9a   : > { %v250_v29 = vmul.f32 %v1354_v19, %v221_v28  ;;  %v251_v30 = vmul.f32 %v1356_v20, %v221_v28  ;;  %v252_v32 = vmul.f32 %v1358_v21, %v221_v28  ;;  %v339_v44 = vmul.f32 %v326_v41, %v1354_v19 }
  0x9b   : > { %v341_v45 = vmul.f32 %v326_v41, %v1358_v21  ;;  %v340_v48 = vmul.f32 %v326_v41, %v1356_v20 }
  0x9c   : > { %277 = vrot.lane.b32.xlu0 %v250_v29, %s1220_s10  ;;  %279 = vrot.lane.b32.xlu1 %v251_v30, %s1220_s10 }
  0x9d   : > { %v225_v31 = vpop.permute.xlu1 %224 }
  0x9e   : > { %v253_v33 = vmul.f32 %v1354_v19, %v225_v31  ;;  %v254_v34 = vmul.f32 %v1356_v20, %v225_v31  ;;  %v255_v35 = vmul.f32 %v1358_v21, %v225_v31  ;;  %v411_v53 = vpop.permute.xlu0 %410 }
  0x9f   : > { %v425_v56 = vmul.f32 %v411_v53, %v1354_v19  ;;  %v426_v58 = vmul.f32 %v411_v53, %v1356_v20  ;;  %v427_v59 = vmul.f32 %v411_v53, %v1358_v21 }
  0xa0   : > { %281 = vrot.lane.b32.xlu0 %v252_v32, %s1220_s10  ;;  %283 = vrot.lane.b32.xlu1 %v253_v33, %s1220_s10 }
  0xa2   : > { %v322_v39 = vpop.permute.xlu1 %321  ;;  %v423_v8 = vpop.permute.xlu0 %422 }
  0xa3   : > { %v337_v40 = vmul.f32 %v322_v39, %v1356_v20  ;;  %v336_v43 = vmul.f32 %v322_v39, %v1354_v19  ;;  %v338_v47 = vmul.f32 %v322_v39, %v1358_v21  ;;  %v434_v10 = vmul.f32 %v423_v8, %v1354_v19 }
  0xa4   : > { %285 = vrot.lane.b32.xlu0 %v254_v34, %s1220_s10  ;;  %287 = vrot.lane.b32.xlu1 %v255_v35, %s1220_s10  ;;  %v435_v13 = vmul.f32 %v423_v8, %v1356_v20  ;;  %v436_v17 = vmul.f32 %v423_v8, %v1358_v21  ;;  %v1224_v39 = vmov 6  }
  0xa6   : > { %v330_v46 = vpop.permute.xlu1 %329 }
  0xa7   : > { %v343_v49 = vmul.f32 %v330_v46, %v1356_v20  ;;  %v342_v51 = vmul.f32 %v330_v46, %v1354_v19  ;;  %v344_v54 = vmul.f32 %v330_v46, %v1358_v21  ;;  %v504_v16 = vpop.permute.xlu0 %503 }
  0xa8   : > { %289 = vrot.lane.b32.xlu0 %v256_v37, %s1220_s10  ;;  %291 = vrot.lane.b32.xlu1 %v257_v38, %s1220_s10  ;;  %v517_v23 = vmul.f32 %v504_v16, %v1354_v19  ;;  %v519_v24 = vmul.f32 %v504_v16, %v1358_v21  ;;  %v518_v28 = vmul.f32 %v504_v16, %v1356_v20 }
  0xaa   : > { %v334_v50 = vpop.permute.xlu1 %333 }
  0xab   : > { %v345_v52 = vmul.f32 %v334_v50, %v1354_v19  ;;  %v347_v55 = vmul.f32 %v334_v50, %v1358_v21  ;;  %v346_v57 = vmul.f32 %v334_v50, %v1356_v20 }
  0xac   : > { %293 = vrot.lane.b32.xlu0 %v258_v42, %s1220_s10  ;;  %362 = vrot.lane.b32.xlu1 %v337_v40, %s1221_s11  ;;  %s1721_s10 = scalar_lea.vmem [#allocation2], %s1067_s9 }
  0xaf   : > { %v415_v60 = vpop.permute.xlu1 %414 }
  0xb0   : > { %360 = vrot.lane.b32.xlu0 %v336_v43, %s1221_s11  ;;  %366 = vrot.lane.b32.xlu1 %v339_v44, %s1221_s11  ;;  %v428_v61 = vmul.f32 %v415_v60, %v1354_v19  ;;  %v429_v62 = vmul.f32 %v415_v60, %v1356_v20  ;;  %v430_v2 = vmul.f32 %v415_v60, %v1358_v21 }
  0xb3   : > { %v419_v63 = vpop.permute.xlu1 %418 }
  0xb4   : > { %364 = vrot.lane.b32.xlu0 %v338_v47, %s1221_s11  ;;  %370 = vrot.lane.b32.xlu1 %v341_v45, %s1221_s11  ;;  %v431_v4 = vmul.f32 %v419_v63, %v1354_v19  ;;  %v432_v5 = vmul.f32 %v419_v63, %v1356_v20  ;;  %v433_v7 = vmul.f32 %v419_v63, %v1358_v21 }
  0xb5   : > { %v211_v63 = vmul.f32 %v1337_v12, %v1360_v22 }
  0xb8   : > { %368 = vrot.lane.b32.xlu0 %v340_v48, %s1221_s11  ;;  %374 = vrot.lane.b32.xlu1 %v343_v49, %s1221_s11  ;;  %v500_v14 = vpop.permute.xlu1 %499 }
  0xb9   : > { %v515_v15 = vmul.f32 %v500_v14, %v1356_v20  ;;  %v514_v18 = vmul.f32 %v500_v14, %v1354_v19  ;;  %v516_v26 = vmul.f32 %v500_v14, %v1358_v21  ;;  %v212_v14 = vmul.f32 %v1335_v11, %v1365_v27 }
  0xbc   : > { %372 = vrot.lane.b32.xlu0 %v342_v51, %s1221_s11  ;;  %378 = vrot.lane.b32.xlu1 %v345_v52, %s1221_s11  ;;  %v508_v25 = vpop.permute.xlu1 %507 }
  0xbd   : > { %v521_v29 = vmul.f32 %v508_v25, %v1356_v20  ;;  %v520_v31 = vmul.f32 %v508_v25, %v1354_v19  ;;  %v522_v33 = vmul.f32 %v508_v25, %v1358_v21 }
  0xc0   : > { %376 = vrot.lane.b32.xlu0 %v344_v54, %s1221_s11  ;;  %382 = vrot.lane.b32.xlu1 %v347_v55, %s1221_s11  ;;  %v512_v30 = vpop.permute.xlu1 %511 }
  0xc1   : > { %v523_v32 = vmul.f32 %v512_v30, %v1354_v19  ;;  %v525_v34 = vmul.f32 %v512_v30, %v1358_v21  ;;  %v524_v35 = vmul.f32 %v512_v30, %v1356_v20 }
  0xc4   : > { %380 = vrot.lane.b32.xlu0 %v346_v57, %s1221_s11  ;;  %449 = vrot.lane.b32.xlu1 %v425_v56, %s1222_s17  ;;  %v210_v57 = vmul.f32 %v1335_v11, %v1360_v22  ;;  %s1073_s11 = sshll.u32 %s1275_s16, 10  ;;  %s1773_s16 = scalar_lea.sflag [#allocation3], %s159_s8 }
  0xc8   : > { %451 = vrot.lane.b32.xlu0 %v426_v58, %s1222_s17  ;;  %453 = vrot.lane.b32.xlu1 %v427_v59, %s1222_s17 }
  0xcc   : > { %455 = vrot.lane.b32.xlu0 %v428_v61, %s1222_s17  ;;  %457 = vrot.lane.b32.xlu1 %v429_v62, %s1222_s17 }
  0xd0   : > { %459 = vrot.lane.b32.xlu0 %v430_v2, %s1222_s17  ;;  %461 = vrot.lane.b32.xlu1 %v431_v4, %s1222_s17 }
  0xd4   : > { %463 = vrot.lane.b32.xlu0 %v432_v5, %s1222_s17  ;;  %465 = vrot.lane.b32.xlu1 %v433_v7, %s1222_s17 }
  0xd8   : > { %467 = vrot.lane.b32.xlu0 %v434_v10, %s1222_s17  ;;  %469 = vrot.lane.b32.xlu1 %v435_v13, %s1222_s17 }
  0xdc   : > { %471 = vrot.lane.b32.xlu0 %v436_v17, %s1222_s17  ;;  %540 = vrot.lane.b32.xlu1 %v515_v15, %s1223_s19  ;;  %v213_v15 = vmul.f32 %v1337_v12, %v1365_v27  ;;  %s1001_s17 = sshll.u32 %s1721_s10, 4  ;;  %s1767_s17 = int_to_ptr.vmem [resolvable:$true] %s1001_s17 }
  0xdd   : > { %p1159_p0 = scmp.lt.s32.totalorder %s1767_s17, %s1157_s27 }
  0xe0   : > { %538 = vrot.lane.b32.xlu0 %v514_v18, %s1223_s19  ;;  %544 = vrot.lane.b32.xlu1 %v517_v23, %s1223_s19 }
  0xe4   : > { %542 = vrot.lane.b32.xlu0 %v516_v26, %s1223_s19  ;;  %548 = vrot.lane.b32.xlu1 %v519_v24, %s1223_s19 }
  0xe8   : > { %546 = vrot.lane.b32.xlu0 %v518_v28, %s1223_s19  ;;  %552 = vrot.lane.b32.xlu1 %v521_v29, %s1223_s19 }
  0xec   : > { %550 = vrot.lane.b32.xlu0 %v520_v31, %s1223_s19  ;;  %556 = vrot.lane.b32.xlu1 %v523_v32, %s1223_s19 }
  0xf0   : > { %554 = vrot.lane.b32.xlu0 %v522_v33, %s1223_s19  ;;  %560 = vrot.lane.b32.xlu1 %v525_v34, %s1223_s19 }
  0xf4   : > { %558 = vrot.lane.b32.xlu0 %v524_v35, %s1223_s19  ;;  %592 = vperm.xlu1 %1143, %v1332_v9  }
  0xf8   : > { %588 = vperm.xlu0 %1142, %v1310_v1   ;;  %596 = vperm.xlu1 %1143, %v1305_v0  }
  0xfc   : > { %600 = vperm.xlu0 %1142, %v1319_v6   ;;  %1144 = vset.pattern.permute.xlu1 %v1224_v39 }
 0x100   : > { %1145 = vset.pattern.permute.xlu0 %v1224_v39 }
 0x105   : > { %v1416_v36 = vpop.permute.xlu1 %271  ;;  %v1418_v37 = vpop.permute.xlu0 %273 }
 0x109   : > { %v1420_v38 = vpop.permute.xlu1 %275 }
 0x10e   : > { %v1422_v40 = vpop.permute.xlu0 %277  ;;  %v1424_v41 = vpop.permute.xlu1 %279 }
 0x112   : > { %v1426_v42 = vpop.permute.xlu0 %281  ;;  %v284_v43 = vpop.permute.xlu1 %283 }
 0x116   : > { %v286_v44 = vpop.permute.xlu0 %285  ;;  %v288_v45 = vpop.permute.xlu1 %287 }
 0x117   : > { %v300_v56 = vsel %vm295_vm0, %v284_v43, %v286_v44  ;;  %v301_v61 = vsel %vm295_vm0, %v286_v44, %v288_v45 }
 0x118   : > { %v316_v58 = vadd.f32 %v300_v56, %v210_v57  ;;  %v317_v4 = vadd.f32 %v301_v61, %v211_v63 }
 0x11a   : > { %v290_v46 = vpop.permute.xlu0 %289  ;;  %v292_v47 = vpop.permute.xlu1 %291 }
 0x11b   : > { %v302_v8 = vsel %vm295_vm0, %v290_v46, %v292_v47 }
 0x11c   : > { %v318_v17 = vadd.f32 %v302_v8, %v212_v14 }
 0x11e   : > { %v294_v48 = vpop.permute.xlu0 %293  ;;  %v1428_v49 = vpop.permute.xlu1 %362 }
 0x11f   : > { %v303_v10 = vsel %vm295_vm0, %v292_v47, %v294_v48 }
 0x120   : > { %v319_v18 = vadd.f32 %v303_v10, %v213_v15 }
 0x122   : > { %v1430_v50 = vpop.permute.xlu0 %360  ;;  %v1432_v51 = vpop.permute.xlu1 %366 }
 0x126   : > { %v1434_v52 = vpop.permute.xlu0 %364  ;;  %v1436_v53 = vpop.permute.xlu1 %370 }
 0x12a   : > { %v1438_v54 = vpop.permute.xlu0 %368  ;;  %v375_v55 = vpop.permute.xlu1 %374 }
 0x12e   : > { %v373_v59 = vpop.permute.xlu0 %372  ;;  %v379_v60 = vpop.permute.xlu1 %378 }
 0x12f   : > { %v389_v62 = vsel %vm384_vm1, %v373_v59, %v375_v55 }
 0x130   : > { %v405_v2 = vadd.f32 %v389_v62, %v316_v58 }
 0x132   : > { %v377_v5 = vpop.permute.xlu0 %376  ;;  %v383_v7 = vpop.permute.xlu1 %382 }
 0x133   : > { %v390_v13 = vsel %vm384_vm1, %v375_v55, %v377_v5 }
 0x134   : > { %v406_v16 = vadd.f32 %v390_v13, %v317_v4 }
 0x136   : > { %v381_v22 = vpop.permute.xlu0 %380  ;;  %v450_v23 = vpop.permute.xlu1 %449 }
 0x137   : > { %v391_v24 = vsel %vm384_vm1, %v379_v60, %v381_v22  ;;  %v392_v25 = vsel %vm384_vm1, %v381_v22, %v383_v7 }
 0x138   : > { %v407_v26 = vadd.f32 %v391_v24, %v318_v17  ;;  %v408_v28 = vadd.f32 %v392_v25, %v319_v18 }
 0x13a   : > { %v452_v29 = vpop.permute.xlu0 %451  ;;  %v454_v30 = vpop.permute.xlu1 %453 }
 0x13b   : > { %v1457_v31 = vsel %vm473_vm2, %v450_v23, %v452_v29  ;;  %v1460_v32 = vsel %vm473_vm2, %v452_v29, %v454_v30 }
 0x13e   : > { %v456_v27 = vpop.permute.xlu0 %455  ;;  %v458_v33 = vpop.permute.xlu1 %457 }
 0x13f   : > { %v1463_v34 = vsel %vm473_vm2, %v456_v27, %v458_v33 }
 0x142   : > { %v460_v35 = vpop.permute.xlu0 %459  ;;  %v462_v39 = vpop.permute.xlu1 %461 }
 0x143   : > { %v1466_v43 = vsel %vm473_vm2, %v458_v33, %v460_v35 }
 0x146   : > { %v464_v44 = vpop.permute.xlu0 %463  ;;  %v466_v45 = vpop.permute.xlu1 %465 }
 0x147   : > { %v478_v46 = vsel %vm473_vm2, %v462_v39, %v464_v44  ;;  %v479_v47 = vsel %vm473_vm2, %v464_v44, %v466_v45 }
 0x148   : > { %v494_v48 = vadd.f32 %v478_v46, %v405_v2  ;;  %v495_v55 = vadd.f32 %v479_v47, %v406_v16 }
 0x14a   : > { %v468_v56 = vpop.permute.xlu0 %467  ;;  %v470_v57 = vpop.permute.xlu1 %469 }
 0x14b   : > { %v480_v58 = vsel %vm473_vm2, %v468_v56, %v470_v57 }
 0x14c   : > { %v496_v59 = vadd.f32 %v480_v58, %v407_v26 }
 0x14e   : > { %v472_v60 = vpop.permute.xlu0 %471  ;;  %v541_v61 = vpop.permute.xlu1 %540 }
 0x14f   : > { %v481_v62 = vsel %vm473_vm2, %v470_v57, %v472_v60 }
 0x150   : > { %v497_v63 = vadd.f32 %v481_v62, %v408_v28 }
 0x152   : > { %v539_v4 = vpop.permute.xlu0 %538  ;;  %v545_v5 = vpop.permute.xlu1 %544 }
 0x153   : > { %v1473_v7 = vsel %vm562_vm3, %v539_v4, %v541_v61 }
 0x156   : > { %v543_v8 = vpop.permute.xlu0 %542  ;;  %v549_v10 = vpop.permute.xlu1 %548 }
 0x157   : > { %v1476_v2 = vsel %vm562_vm3, %v541_v61, %v543_v8  ;;  %v1227_v8 = vmov 8  }
 0x15a   : > { %v547_v13 = vpop.permute.xlu0 %546  ;;  %v553_v14 = vpop.permute.xlu1 %552 }
 0x15b   : > { %v1479_v15 = vsel %vm562_vm3, %v545_v5, %v547_v13  ;;  %v1482_v16 = vsel %vm562_vm3, %v547_v13, %v549_v10  ;;  %v1226_v5 = vmov 7  }
 0x15e   : > { %v551_v17 = vpop.permute.xlu0 %550  ;;  %v557_v23 = vpop.permute.xlu1 %556 }
 0x15f   : > { %v567_v18 = vsel %vm562_vm3, %v551_v17, %v553_v14 }
 0x160   : > { %v1485_v22 = vadd.f32 %v567_v18, %v494_v48 }
 0x162   : > { %v555_v24 = vpop.permute.xlu0 %554  ;;  %v561_v28 = vpop.permute.xlu1 %560 }
 0x163   : > { %v568_v25 = vsel %vm562_vm3, %v553_v14, %v555_v24 }
 0x164   : > { %v1488_v26 = vadd.f32 %v568_v25, %v495_v55 }
 0x166   : > { %v559_v29 = vpop.permute.xlu0 %558 }
 0x167   : > { %v569_v30 = vsel %vm562_vm3, %v557_v23, %v559_v29  ;;  %v570_v27 = vsel %vm562_vm3, %v559_v29, %v561_v28 }
 0x168   : > { %v1492_v33 = vadd.f32 %v569_v30, %v496_v59  ;;  %v1494_v35 = vadd.f32 %v570_v27, %v497_v63 }
 0x16f   : > { %v593_v44 = vpop.permute.xlu1 %592 }
 0x170   : > { %v606_v47 = vmul.f32 %v593_v44, %v1354_v19  ;;  %v607_v55 = vmul.f32 %v593_v44, %v1356_v20  ;;  %v608_v56 = vmul.f32 %v593_v44, %v1358_v21 }
 0x173   : > { %v589_v39 = vpop.permute.xlu0 %588  ;;  %v597_v57 = vpop.permute.xlu1 %596 }
 0x174   : > { %v603_v45 = vmul.f32 %v589_v39, %v1354_v19  ;;  %v604_v46 = vmul.f32 %v589_v39, %v1356_v20  ;;  %v605_v48 = vmul.f32 %v589_v39, %v1358_v21  ;;  %v609_v58 = vmul.f32 %v597_v57, %v1354_v19 }
 0x175   : > { %v610_v59 = vmul.f32 %v597_v57, %v1356_v20  ;;  %v611_v62 = vmul.f32 %v597_v57, %v1358_v21 }
 0x176   : > { %629 = vrot.lane.b32.xlu0 %v604_v46, %s1225_s20  ;;  %627 = vrot.lane.b32.xlu1 %v603_v45, %s1225_s20 }
 0x177   : > { %v601_v60 = vpop.permute.xlu0 %600 }
 0x178   : > { %v612_v61 = vmul.f32 %v601_v60, %v1354_v19  ;;  %v613_v63 = vmul.f32 %v601_v60, %v1356_v20  ;;  %v614_v4 = vmul.f32 %v601_v60, %v1358_v21 }
 0x17a   : > { %631 = vrot.lane.b32.xlu1 %v605_v48, %s1225_s20  ;;  %633 = vrot.lane.b32.xlu0 %v606_v47, %s1225_s20 }
 0x17e   : > { %635 = vrot.lane.b32.xlu1 %v607_v55, %s1225_s20  ;;  %637 = vrot.lane.b32.xlu0 %v608_v56, %s1225_s20 }
 0x182   : > { %641 = vrot.lane.b32.xlu0 %v610_v59, %s1225_s20  ;;  %639 = vrot.lane.b32.xlu1 %v609_v58, %s1225_s20 }
 0x186   : > { %645 = vrot.lane.b32.xlu0 %v612_v61, %s1225_s20  ;;  %643 = vrot.lane.b32.xlu1 %v611_v62, %s1225_s20 }
 0x18a   : > { %649 = vrot.lane.b32.xlu0 %v614_v4, %s1225_s20  ;;  %647 = vrot.lane.b32.xlu1 %v613_v63, %s1225_s20 }
 0x18e   : > { %681 = vperm.xlu0 %1145, %v1332_v9   ;;  %677 = vperm.xlu1 %1144, %v1310_v1  }
 0x192   : > { %1146 = vset.pattern.permute.xlu0 %v1226_v5  ;;  %685 = vperm.xlu1 %1144, %v1305_v0  }
 0x193   : > { %766 = vperm.xlu0 %1146, %v1310_v1  }
 0x196   : > { %689 = vperm.xlu1 %1144, %v1319_v6  }
 0x197   : > { %778 = vperm.xlu0 %1146, %v1319_v6  }
 0x19a   : > { %1147 = vset.pattern.permute.xlu1 %v1226_v5 }
 0x19b   : > { %1149 = vset.pattern.permute.xlu0 %v1227_v8  ;;  %770 = vperm.xlu1 %1147, %v1332_v9  }
 0x19c   : > { %859 = vperm.xlu0 %1149, %v1332_v9  }
 0x19f   : > { %774 = vperm.xlu1 %1147, %v1305_v0  }
 0x1a0   : > { %1150 = vset.pattern.permute.xlu0 %v1214_v3 }
 0x1a1   : > { %177 = vperm.xlu0 %1150, %v1310_v1  }
 0x1a3   : > { %1148 = vset.pattern.permute.xlu1 %v1227_v8 }
 0x1a4   : > { %855 = vperm.xlu1 %1148, %v1310_v1  }
 0x1a5   : > { %182 = vperm.xlu0 %1150, %v1332_v9  }
 0x1a8   : > { %863 = vperm.xlu1 %1148, %v1305_v0  }
 0x1ac   : > { %867 = vperm.xlu1 %1148, %v1319_v6  }
 0x1b0   : > { %1151 = vset.pattern.permute.xlu1 %v1214_v3 }
 0x1e8   : > { %v630_v10 = vpop.permute.xlu0 %629  ;;  %v628_v13 = vpop.permute.xlu1 %627 }
 0x1e9   : > { %v1525_v14 = vsel %vm651_vm4, %v628_v13, %v630_v10 }
 0x1ec   : > { %v634_v17 = vpop.permute.xlu0 %633  ;;  %v632_v18 = vpop.permute.xlu1 %631 }
 0x1ed   : > { %v1528_v23 = vsel %vm651_vm4, %v630_v10, %v632_v18 }
 0x1f0   : > { %v638_v1 = vpop.permute.xlu0 %637  ;;  %v636_v24 = vpop.permute.xlu1 %635 }
 0x1f1   : > { %v1531_v9 = vsel %vm651_vm4, %v634_v17, %v636_v24  ;;  %v1534_v0 = vsel %vm651_vm4, %v636_v24, %v638_v1  ;;  %v296_v24 = vsel %vm295_vm0, %v1416_v36, %v1418_v37 }
 0x1f4   : > { %v642_v3 = vpop.permute.xlu0 %641  ;;  %v640_v6 = vpop.permute.xlu1 %639 }
 0x1f5   : > { %v656_v25 = vsel %vm651_vm4, %v640_v6, %v642_v3 }
 0x1f6   : > { %v1538_v28 = vadd.f32 %v656_v25, %v1485_v22 }
 0x1f8   : > { %v646_v29 = vpop.permute.xlu0 %645  ;;  %v644_v30 = vpop.permute.xlu1 %643 }
 0x1f9   : > { %v657_v27 = vsel %vm651_vm4, %v642_v3, %v644_v30  ;;  %v297_v3 = vsel %vm295_vm0, %v1418_v37, %v1420_v38 }
 0x1fa   : > { %v1542_v39 = vadd.f32 %v657_v27, %v1488_v26 }
 0x1fc   : > { %v650_v44 = vpop.permute.xlu0 %649  ;;  %v648_v45 = vpop.permute.xlu1 %647 }
 0x1fd   : > { %v658_v46 = vsel %vm651_vm4, %v646_v29, %v648_v45  ;;  %v659_v47 = vsel %vm651_vm4, %v648_v45, %v650_v44  ;;  %v385_v29 = vsel %vm384_vm1, %v1430_v50, %v1428_v49  ;;  %v386_v44 = vsel %vm384_vm1, %v1428_v49, %v1434_v52 }
 0x1fe   : > { %v1547_v48 = vadd.f32 %v658_v46, %v1492_v33  ;;  %v1550_v55 = vadd.f32 %v659_v47, %v1494_v35  ;;  %v299_v49 = vsel %vm295_vm0, %v1424_v41, %v1426_v42 }
 0x209   : > { %v678_v22 = vpop.permute.xlu1 %677  ;;  %v682_v56 = vpop.permute.xlu0 %681 }
 0x20a   : > { %v692_v57 = vmul.f32 %v678_v22, %v1354_v19  ;;  %v693_v58 = vmul.f32 %v678_v22, %v1356_v20  ;;  %v695_v26 = vmul.f32 %v682_v56, %v1354_v19  ;;  %v694_v59 = vmul.f32 %v678_v22, %v1358_v21 }
 0x20b   : > { %v696_v60 = vmul.f32 %v682_v56, %v1356_v20  ;;  %v697_v61 = vmul.f32 %v682_v56, %v1358_v21  ;;  %v298_v22 = vsel %vm295_vm0, %v1422_v40, %v1424_v41 }
 0x20c   : > { %718 = vrot.lane.b32.xlu1 %v693_v58, %s1228_s24  ;;  %716 = vrot.lane.b32.xlu0 %v692_v57, %s1228_s24 }
 0x20d   : > { %v686_v35 = vpop.permute.xlu1 %685 }
 0x20e   : > { %v767_v33 = vpop.permute.xlu0 %766  ;;  %v698_v63 = vmul.f32 %v686_v35, %v1354_v19  ;;  %v699_v4 = vmul.f32 %v686_v35, %v1356_v20  ;;  %v700_v10 = vmul.f32 %v686_v35, %v1358_v21 }
 0x20f   : > { %v781_v36 = vmul.f32 %v767_v33, %v1354_v19  ;;  %v782_v45 = vmul.f32 %v767_v33, %v1356_v20 }
 0x210   : > { %722 = vrot.lane.b32.xlu1 %v695_v26, %s1228_s24  ;;  %720 = vrot.lane.b32.xlu0 %v694_v59, %s1228_s24  ;;  %v783_v59 = vmul.f32 %v767_v33, %v1358_v21 }
 0x211   : > { %v690_v5 = vpop.permute.xlu1 %689 }
 0x212   : > { %v1562_v62 = vpop.permute.xlu0 %778  ;;  %v701_v13 = vmul.f32 %v690_v5, %v1354_v19  ;;  %v702_v6 = vmul.f32 %v690_v5, %v1356_v20  ;;  %v703_v25 = vmul.f32 %v690_v5, %v1358_v21  ;;  %v172_v5 = vld [vmem:[%s1815_s2 + $0x10] sm:$0xff] }
 0x214   : > { %726 = vrot.lane.b32.xlu1 %v697_v61, %s1228_s24  ;;  %724 = vrot.lane.b32.xlu0 %v696_v60, %s1228_s24  ;;  %v792_v61 = vmul.f32 %v1562_v62, %v1358_v21 }
 0x216   : > { %v771_v26 = vpop.permute.xlu1 %770 }
 0x217   : > { %v1568_v8 = vpop.permute.xlu0 %859  ;;  %v784_v40 = vmul.f32 %v771_v26, %v1354_v19  ;;  %v785_v33 = vmul.f32 %v771_v26, %v1356_v20 }
 0x218   : > { %730 = vrot.lane.b32.xlu1 %v699_v4, %s1228_s24  ;;  %728 = vrot.lane.b32.xlu0 %v698_v63, %s1228_s24  ;;  %v171_v63 = vld [vmem:[%s1815_s2 + $0x8] sm:$0xff]  ;;  %v170_v4 = vld [vmem:[%s1815_s2] sm:$0xff] }
 0x21a   : > { %v775_v60 = vpop.permute.xlu1 %774 }
 0x21c   : > { %v178_v17 = vpop.permute.xlu0 %177  ;;  %732 = vrot.lane.b32.xlu0 %v700_v10, %s1228_s24  ;;  %734 = vrot.lane.b32.xlu1 %v701_v13, %s1228_s24 }
 0x21d   : > { %v206_v18 = vmul.f32 %v1335_v11, %v178_v17  ;;  %v207_v1 = vmul.f32 %v1337_v12, %v178_v17 }
 0x21f   : > { %v312_v30 = vadd.f32 %v296_v24, %v206_v18  ;;  %v313_v27 = vadd.f32 %v297_v3, %v207_v1  ;;  %v856_v10 = vpop.permute.xlu1 %855  ;;  %v873_v18 = vmul.f32 %v1568_v8, %v1354_v19  ;;  %v874_v24 = vmul.f32 %v1568_v8, %v1356_v20 }
 0x220   : > { %v183_v46 = vpop.permute.xlu0 %182  ;;  %736 = vrot.lane.b32.xlu0 %v702_v6, %s1228_s24  ;;  %738 = vrot.lane.b32.xlu1 %v703_v25, %s1228_s24  ;;  %v870_v13 = vmul.f32 %v856_v10, %v1354_v19  ;;  %v871_v17 = vmul.f32 %v856_v10, %v1356_v20  ;;  %v872_v1 = vmul.f32 %v856_v10, %v1358_v21  ;;  %s1765_s24 = scalar_lea.hbm %s1816_s3, %s1073_s11 }
 0x221   : > { %v401_v37 = vadd.f32 %v385_v29, %v312_v30  ;;  %v402_v38 = vadd.f32 %v386_v44, %v313_v27  ;;  %v208_v47 = vmul.f32 %v1335_v11, %v183_v46  ;;  %v209_v50 = vmul.f32 %v1337_v12, %v183_v46 }
 0x222   : > { %v387_v11 = vsel %vm384_vm1, %v1432_v51, %v1438_v54  ;;  %v388_v12 = vsel %vm384_vm1, %v1438_v54, %v1436_v53  ;;  %v875_v3 = vmul.f32 %v1568_v8, %v1358_v21 }
 0x223   : > { %v490_v52 = vadd.f32 %v1457_v31, %v401_v37  ;;  %v491_v56 = vadd.f32 %v1460_v32, %v402_v38  ;;  %v314_v57 = vadd.f32 %v298_v22, %v208_v47  ;;  %v315_v58 = vadd.f32 %v299_v49, %v209_v50  ;;  %v864_v6 = vpop.permute.xlu1 %863 }
 0x224   : > { %805 = vrot.lane.b32.xlu0 %v781_v36, %s1229_s25  ;;  %807 = vrot.lane.b32.xlu1 %v782_v45, %s1229_s25  ;;  %v876_v25 = vmul.f32 %v864_v6, %v1354_v19  ;;  %v877_v29 = vmul.f32 %v864_v6, %v1356_v20  ;;  %v878_v27 = vmul.f32 %v864_v6, %v1358_v21 }
 0x225   : > { %v403_v41 = vadd.f32 %v387_v11, %v314_v57  ;;  %v404_v42 = vadd.f32 %v388_v12, %v315_v58  ;;  %v579_v31 = vadd.f32 %v1473_v7, %v490_v52  ;;  %v580_v32 = vadd.f32 %v1476_v2, %v491_v56 }
 0x227   : > { %v492_v51 = vadd.f32 %v1463_v34, %v403_v41  ;;  %v493_v35 = vadd.f32 %v1466_v43, %v404_v42  ;;  %v1621_v53 = vadd.f32 %v1525_v14, %v579_v31  ;;  %v1624_v54 = vadd.f32 %v1528_v23, %v580_v32  ;;  %v868_v30 = vpop.permute.xlu1 %867 }
 0x228   : > { %809 = vrot.lane.b32.xlu0 %v783_v59, %s1229_s25  ;;  %811 = vrot.lane.b32.xlu1 %v784_v40, %s1229_s25  ;;  %v786_v34 = vmul.f32 %v771_v26, %v1358_v21  ;;  %v787_v23 = vmul.f32 %v775_v60, %v1354_v19  ;;  %v879_v44 = vmul.f32 %v868_v30, %v1354_v19 }
 0x229   : > { %v581_v7 = vadd.f32 %v1479_v15, %v492_v51  ;;  %v582_v2 = vadd.f32 %v1482_v16, %v493_v35  ;;  %v788_v15 = vmul.f32 %v775_v60, %v1356_v20  ;;  %v790_v16 = vmul.f32 %v1562_v62, %v1354_v19 }
 0x22a   : > { %v880_v8 = vmul.f32 %v868_v30, %v1356_v20  ;;  %v881_v36 = vmul.f32 %v868_v30, %v1358_v21 }
 0x22b   : > { %v1633_v43 = vadd.f32 %v1531_v9, %v581_v7  ;;  %v1636_v14 = vadd.f32 %v1534_v0, %v582_v2  ;;  %v789_v9 = vmul.f32 %v775_v60, %v1358_v21  ;;  %v791_v0 = vmul.f32 %v1562_v62, %v1356_v20  ;;  %v173_v62 = vld [vmem:[%s1815_s2 + $0x18] sm:$0xff] }
 0x22c   : > { %813 = vrot.lane.b32.xlu0 %v785_v33, %s1229_s25  ;;  %815 = vrot.lane.b32.xlu1 %v786_v34, %s1229_s25 }
 0x230   : > { %819 = vrot.lane.b32.xlu1 %v788_v15, %s1229_s25  ;;  %817 = vrot.lane.b32.xlu0 %v787_v23, %s1229_s25 }
 0x234   : > { %823 = vrot.lane.b32.xlu1 %v790_v16, %s1229_s25  ;;  %821 = vrot.lane.b32.xlu0 %v789_v9, %s1229_s25 }
 0x238   : > { %827 = vrot.lane.b32.xlu1 %v792_v61, %s1229_s25  ;;  %825 = vrot.lane.b32.xlu0 %v791_v0, %s1229_s25  ;;  %s1152_s25 = scalar_lea.vmem %s1767_s17, 1024 }
 0x239   : > { %p1153_p11 = scmp.ne.s32.totalorder %s1767_s17, %s1152_s25  ;;  %p1160_p1 = scmp.lt.s32.totalorder %s1158_s28, %s1152_s25 }
 0x23b   : > { %p1154_p12 = pnand %p1153_p11, %p1292_p5  ;;  %p1161_p2 = por %p1160_p1, %p1159_p0 }
 0x23c   : > { %950 = vperm.xlu1 %1151, %v171_v63   ;;  %945 = vperm.xlu0 %1150, %v170_v4  }
 0x23d   : > { %p1155_p13 = pneg %p1154_p12 }
 0x23f   : > { %p1162_p3 = pnand %p1161_p2, %p1155_p13 }
 0x240   : > { %955 = vperm.xlu1 %1151, %v172_v5   ;;  %960 = vperm.xlu0 %1150, %v173_v62  }
 0x244   : > { %896 = vrot.lane.b32.xlu0 %v871_v17, %s1230_s7  ;;  %894 = vrot.lane.b32.xlu1 %v870_v13, %s1230_s7 }
 0x248   : > { %900 = vrot.lane.b32.xlu0 %v873_v18, %s1230_s7  ;;  %898 = vrot.lane.b32.xlu1 %v872_v1, %s1230_s7 }
 0x24c   : > { %904 = vrot.lane.b32.xlu0 %v875_v3, %s1230_s7  ;;  %902 = vrot.lane.b32.xlu1 %v874_v24, %s1230_s7 }
 0x250   : > { %908 = vrot.lane.b32.xlu0 %v877_v29, %s1230_s7  ;;  %906 = vrot.lane.b32.xlu1 %v876_v25, %s1230_s7 }
 0x254   : > { %910 = vrot.lane.b32.xlu1 %v878_v27, %s1230_s7  ;;  %912 = vrot.lane.b32.xlu0 %v879_v44, %s1230_s7 }
 0x258   : > { %914 = vrot.lane.b32.xlu1 %v880_v8, %s1230_s7  ;;  %916 = vrot.lane.b32.xlu0 %v881_v36, %s1230_s7 }
 0x27e   : > { %v717_v45 = vpop.permute.xlu0 %716  ;;  %v719_v46 = vpop.permute.xlu1 %718 }
 0x27f   : > { %v741_v7 = vsel %vm740_vm5, %v717_v45, %v719_v46 }
 0x280   : > { %v757_v60 = vadd.f32 %v741_v7, %v1621_v53 }
 0x282   : > { %v721_v37 = vpop.permute.xlu0 %720  ;;  %v723_v38 = vpop.permute.xlu1 %722 }
 0x283   : > { %v742_v23 = vsel %vm740_vm5, %v719_v46, %v721_v37 }
 0x284   : > { %v758_v63 = vadd.f32 %v742_v23, %v1624_v54 }
 0x286   : > { %v725_v47 = vpop.permute.xlu0 %724  ;;  %v727_v50 = vpop.permute.xlu1 %726 }
 0x287   : > { %v743_v5 = vsel %vm740_vm5, %v723_v38, %v725_v47  ;;  %v744_v53 = vsel %vm740_vm5, %v725_v47, %v727_v50 }
 0x288   : > { %v759_v3 = vadd.f32 %v743_v5, %v1633_v43  ;;  %v760_v54 = vadd.f32 %v744_v53, %v1636_v14 }
 0x28a   : > { %v729_v22 = vpop.permute.xlu0 %728  ;;  %v1682_v49 = vpop.permute.xlu1 %730 }
 0x28b   : > { %v745_v29 = vsel %vm740_vm5, %v729_v22, %v1682_v49 }
 0x28c   : > { %v761_v46 = vadd.f32 %v745_v29, %v1538_v28 }
 0x28e   : > { %v1684_v52 = vpop.permute.xlu0 %732  ;;  %v1686_v19 = vpop.permute.xlu1 %734 }
 0x28f   : > { %v746_v50 = vsel %vm740_vm5, %v1682_v49, %v1684_v52 }
 0x290   : > { %v762_v28 = vadd.f32 %v746_v50, %v1542_v39 }
 0x292   : > { %v1688_v56 = vpop.permute.xlu0 %736  ;;  %v1690_v20 = vpop.permute.xlu1 %738 }
 0x293   : > { %v747_v49 = vsel %vm740_vm5, %v1686_v19, %v1688_v56  ;;  %v748_v52 = vsel %vm740_vm5, %v1688_v56, %v1690_v20 }
 0x294   : > { %v763_v56 = vadd.f32 %v747_v49, %v1547_v48  ;;  %v764_v20 = vadd.f32 %v748_v52, %v1550_v55 }
 0x296   : > { %v806_v21 = vpop.permute.xlu0 %805  ;;  %v808_v57 = vpop.permute.xlu1 %807 }
 0x297   : > { %v830_v34 = vsel %vm829_vm6, %v806_v21, %v808_v57 }
 0x298   : > { %v846_v15 = vadd.f32 %v830_v34, %v757_v60 }
 0x29a   : > { %v810_v58 = vpop.permute.xlu0 %809  ;;  %v812_v26 = vpop.permute.xlu1 %811 }
 0x29b   : > { %v831_v0 = vsel %vm829_vm6, %v808_v57, %v810_v58 }
 0x29c   : > { %v847_v62 = vadd.f32 %v831_v0, %v758_v63 }
 0x29e   : > { %v814_v11 = vpop.permute.xlu0 %813  ;;  %v816_v12 = vpop.permute.xlu1 %815 }
 0x29f   : > { %v832_v18 = vsel %vm829_vm6, %v812_v26, %v814_v11  ;;  %v833_v1 = vsel %vm829_vm6, %v814_v11, %v816_v12 }
 0x2a0   : > { %v848_v30 = vadd.f32 %v832_v18, %v759_v3  ;;  %v849_v27 = vadd.f32 %v833_v1, %v760_v54 }
 0x2a2   : > { %v818_v40 = vpop.permute.xlu0 %817  ;;  %v820_v41 = vpop.permute.xlu1 %819 }
 0x2a3   : > { %v834_v45 = vsel %vm829_vm6, %v818_v40, %v820_v41 }
 0x2a4   : > { %v850_v22 = vadd.f32 %v834_v45, %v761_v46 }
 0x2a6   : > { %v822_v42 = vpop.permute.xlu0 %821  ;;  %v1692_v31 = vpop.permute.xlu1 %823 }
 0x2a7   : > { %v835_v11 = vsel %vm829_vm6, %v820_v41, %v822_v42 }
 0x2aa   : > { %v1694_v32 = vpop.permute.xlu0 %825  ;;  %v1696_v59 = vpop.permute.xlu1 %827 }
 0x2ab   : > { %v836_v39 = vsel %vm829_vm6, %v1692_v31, %v1694_v32  ;;  %v837_v19 = vsel %vm829_vm6, %v1694_v32, %v1696_v59 }
 0x2b7   : > { %v946_v51 = vpop.permute.xlu0 %945  ;;  %v951_v35 = vpop.permute.xlu1 %950 }
 0x2bb   : > { %v1699_v2 = vpop.permute.xlu0 %960  ;;  %v1701_v33 = vpop.permute.xlu1 %955 }
 0x2bf   : > { %v897_v16 = vpop.permute.xlu0 %896  ;;  %v895_v9 = vpop.permute.xlu1 %894 }
 0x2c0   : > { %v919_v61 = vsel %vm918_vm7, %v895_v9, %v897_v16  ;;  %v853_v9 = vadd.f32 %v837_v19, %v764_v20 }
 0x2c1   : > { %v935_v4 = vadd.f32 %v919_v61, %v846_v15 }
 0x2c3   : > { %v963_v10 = vadd.f32 %v946_v51, %v935_v4  ;;  %v901_v13 = vpop.permute.xlu0 %900  ;;  %v899_v17 = vpop.permute.xlu1 %898 }
 0x2c4   : > { %v920_v24 = vsel %vm918_vm7, %v897_v16, %v899_v17  ;;  %v852_v16 = vadd.f32 %v836_v39, %v763_v56 }
 0x2c5   : > { %v971_v6 = vmax.f32 %v963_v10, 0.0  ;;  %v936_v25 = vadd.f32 %v920_v24, %v847_v62 }
 0x2c7   : > { %979 = vst [vmem:[%s1721_s10] sm:$0xff] %v971_v6  ;;  %v964_v44 = vadd.f32 %v946_v51, %v936_v25  ;;  %v905_v8 = vpop.permute.xlu0 %904  ;;  %v903_v36 = vpop.permute.xlu1 %902 }
 0x2c8   : > { %v921_v43 = vsel %vm918_vm7, %v901_v13, %v903_v36  ;;  %v922_v14 = vsel %vm918_vm7, %v903_v36, %v905_v8 }
 0x2c9   : > { %v972_v37 = vmax.f32 %v964_v44, 0.0  ;;  %v937_v38 = vadd.f32 %v921_v43, %v848_v30  ;;  %v938_v47 = vadd.f32 %v922_v14, %v849_v27 }
 0x2cb   : > { %980 = vst [vmem:[%s1721_s10 + $0x8] sm:$0xff] %v972_v37  ;;  %v965_v21 = vadd.f32 %v951_v35, %v937_v38  ;;  %v966_v57 = vadd.f32 %v951_v35, %v938_v47  ;;  %v909_v58 = vpop.permute.xlu0 %908  ;;  %v907_v26 = vpop.permute.xlu1 %906  ;;  %v851_v35 = vadd.f32 %v835_v11, %v762_v28 }
 0x2cc   : > { %v923_v12 = vsel %vm918_vm7, %v907_v26, %v909_v58 }
 0x2cd   : > { %v973_v40 = vmax.f32 %v965_v21, 0.0  ;;  %v974_v51 = vmax.f32 %v966_v57, 0.0  ;;  %v939_v7 = vadd.f32 %v923_v12, %v850_v22 }
 0x2cf   : > { %981 = vst [vmem:[%s1721_s10 + $0x10] sm:$0xff] %v973_v40  ;;  %982 = vst [vmem:[%s1721_s10 + $0x18] sm:$0xff] %v974_v51  ;;  %v967_v41 = vadd.f32 %v1701_v33, %v939_v7  ;;  %v913_v42 = vpop.permute.xlu0 %912  ;;  %v911_v34 = vpop.permute.xlu1 %910 }
 0x2d0   : > { %v924_v60 = vsel %vm918_vm7, %v909_v58, %v911_v34 }
 0x2d1   : > { %v975_v23 = vmax.f32 %v967_v41, 0.0  ;;  %v940_v15 = vadd.f32 %v924_v60, %v851_v35 }
 0x2d3   : > { %983 = vst [vmem:[%s1721_s10 + $0x20] sm:$0xff] %v975_v23  ;;  %v968_v31 = vadd.f32 %v1701_v33, %v940_v15  ;;  %v917_v0 = vpop.permute.xlu0 %916  ;;  %v915_v61 = vpop.permute.xlu1 %914 }
 0x2d4   : > { %v925_v32 = vsel %vm918_vm7, %v913_v42, %v915_v61  ;;  %v926_v48 = vsel %vm918_vm7, %v915_v61, %v917_v0 }
 0x2d5   : > { %v976_v59 = vmax.f32 %v968_v31, 0.0  ;;  %v941_v63 = vadd.f32 %v925_v32, %v852_v16  ;;  %v942_v55 = vadd.f32 %v926_v48, %v853_v9 }
 0x2d7   : > { %984 = vst [vmem:[%s1721_s10 + $0x28] sm:$0xff] %v976_v59  ;;  %v969_v4 = vadd.f32 %v1699_v2, %v941_v63  ;;  %v970_v33 = vadd.f32 %v1699_v2, %v942_v55 }
 0x2d9   : > { %v977_v5 = vmax.f32 %v969_v4, 0.0  ;;  %v978_v53 = vmax.f32 %v970_v33, 0.0 }
 0x2db   : > { %985 = vst [vmem:[%s1721_s10 + $0x30] sm:$0xff] %v977_v5  ;;  %986 = vst [vmem:[%s1721_s10 + $0x38] sm:$0xff] %v978_v53 }
 0x2dc   : > { %1165 = shalt.err (!%p1162_p3)
}
 0x2dd   : > { %s1166_s29 = scalar_lea.hbm %s1765_s24, 1024  ;;  %s1170_s5 = scalar_lea.hbm %s1816_s3, 2048 }
 0x2de   : > { %p1167_p4 = scmp.ne.s32.totalorder %s1765_s24, %s1166_s29  ;;  %p1171_p9 = scmp.lt.s32.totalorder %s1765_s24, %s1816_s3 }
 0x2df   : > { %p1172_p10 = scmp.lt.s32.totalorder %s1170_s5, %s1166_s29 }
 0x2e0   : > { %p1168_p7 = pnand %p1167_p4, %p1292_p5 }
 0x2e1   : > { %p1173_p11 = por %p1172_p10, %p1171_p9 }
 0x2e2   : > { %p1169_p8 = pneg %p1168_p7 }
 0x2e4   : > { %p1174_p12 = pnand %p1173_p11, %p1169_p8 }
 0x2e6   : > { %1177 = shalt.err (!%p1174_p12)
}
 0x2e7   : > { %s1232_s8 = smov 256   ;;  %s1233_s9 = smov 16  }
 0x2e8   : > { %1075 = dma.vmem_to_hbm [thread:$0]  (%p1292_p5), %s1767_s17, 1024, %s1765_s24, %s1773_s16, %s1232_s8, %s1232_s8, %s1233_s9  }
 0x2e9 PF: > { %p1081_p13 = scmp.ge.s32.totalorder %s1212_s15, 2  ;;  %s1016_s10 = sand.u32 1, %s1200_s12  }
 0x2ea   : > { %s1017_s11 = scalar_lea.sflag [#allocation3], %s1016_s10 }
 0x2eb   : > { %p1078_p0 = pnand %p1081_p13, %p1296_p6 }
 0x2ed   : > { %p1079_p1 = pneg %p1078_p0 }
 0x2ef   : > { %1195 = dma.done.wait (%p1079_p1), %s1017_s11, 1024  }
 0x2f0   : > { %1197 = vsyncadd (%p1079_p1), %s1017_s11, 4294966272  ;;  %p13_p2 = scmp.ge.s32.totalorder %s1279_s18, 4   ;;  %s1819_s12 = smov %s1204_s13 }
 0x2f1   : > { %s1820_s13 = smov %s1208_s14  ;;  %s1821_s14 = smov %s1290_s21 }
 0x2f2   : > { %s1822_s15 = smov %s1279_s18  ;;  %15 = sbr.rel (!%p13_p2) target bundleno = 3 (0x3), region = 67 }
 0x2f7   :  { %1022 = vsyncpa [#allocation3], 1 }
 0x2f8   :  { %1024 = vsyncpa [#allocation3 + $0x1], 1 }

</bundles_post_ra>
